<compile_context>
chip_gen: v7x
topology: tpu7x:2x2x1
jax: 0.10.0
libtpu: 0.0.40
codegen_flags: <defaults>
</compile_context>

<pallas_src>
import math

import jax
import jax.numpy as jnp
from jax.experimental import pallas as pl
from jax.experimental.pallas import tpu as pltpu

_K0 = math.sqrt(2.0 / math.pi)       # sqrt(2/pi)
_K1 = 0.044715 * _K0                 # 0.044715 * sqrt(2/pi)

_LANE = 128
_TARGET_BLOCK_ELEMS = 256 * 1024     # ~1 MiB of f32 per block
_MIN_GRID_STEPS = 8                  # keep both v7x TensorCores fed


def _gelu_kernel(x_ref, o_ref):
    # Compute in f32 regardless of I/O dtype (keeps cubic/tanh accurate and
    # avoids implicit per-op bf16<->f32 bouncing on v5e).
    x = x_ref[...].astype(jnp.float32)
    # 0.5*x*(1 + tanh(sqrt(2/pi)*(x + 0.044715*x^3)))
    #   = hx + hx*tanh(x*(K0 + K1*x*x)),  hx = 0.5*x     (7 VALU ops + 1 EUP tanh)
    inner = x * (_K0 + _K1 * (x * x))
    hx = 0.5 * x
    o_ref[...] = (hx + hx * jnp.tanh(inner)).astype(o_ref.dtype)


def _choose_cols(n: int):
    """Largest lane-dense width that divides n exactly (avoids any padding)."""
    for c in (2048, 1024, 512, 256, 128):
        if n % c == 0:
            return c
    return None


def gelu(x: jax.Array) -> jax.Array:
    orig_shape, orig_dtype = x.shape, x.dtype
    n = x.size
    if n == 0:
        return x

    cols = _choose_cols(n)
    if cols is None:
        # Ragged tail (n not a multiple of 128): rare fallback that pads the
        # flat tail. TODO(synk): mask the last tile in-kernel instead of copying.
        cols = _LANE
        n_pad = pl.cdiv(n, cols) * cols
        x_flat = jnp.pad(jnp.ravel(x), (0, n_pad - n))
    else:
        n_pad = n
        x_flat = jnp.ravel(x)

    rows = n_pad // cols
    x2d = x_flat.reshape(rows, cols)

    # Block rows: ~1 MiB f32 per block, sublane-aligned to 16 (covers bf16
    # packing too); shrink for medium inputs so the grid has >= ~8 steps.
    br = max(16, (_TARGET_BLOCK_ELEMS // cols) // 16 * 16)
    if br >= rows:
        br = rows                       # one block covers the whole slab
    elif rows < _MIN_GRID_STEPS * br:
        br = max((_TARGET_BLOCK_ELEMS // 4 // cols) // 16 * 16,   # >= ~256 KiB
                 (rows // _MIN_GRID_STEPS) // 16 * 16,
                 16)
    grid = pl.cdiv(rows, br)

    out2d = pl.pallas_call(
        _gelu_kernel,
        out_shape=jax.ShapeDtypeStruct((rows, cols), orig_dtype),
        grid_spec=pltpu.PrefetchScalarGridSpec(
            num_scalar_prefetch=0,
            grid=(grid,),
            in_specs=[pl.BlockSpec((br, cols), lambda i: (i, 0))],
            out_specs=pl.BlockSpec((br, cols), lambda i: (i, 0)),
        ),
        compiler_params=pltpu.CompilerParams(
            dimension_semantics=("parallel",)),
    )(x2d)

    out_flat = out2d.reshape(-1)
    if n_pad != n:
        out_flat = out_flat[:n]
    return out_flat.reshape(orig_shape)


def _gelu_ref(x):
    return 0.5 * x * (1.0 + jnp.tanh(
        math.sqrt(2.0 / math.pi) * (x + 0.044715 * jnp.power(x, 3))))


if __name__ == "__main__":
    key = jax.random.PRNGKey(0)
    k1, k2, k3, k4 = jax.random.split(key, 4)

    # Primary case from the module spec (2, 4, 16, 16) f32.
    x = jax.random.normal(k1, (2, 4, 16, 16), dtype=jnp.float32)
    y = gelu(x)
    jax.block_until_ready(y)
    assert y.shape == x.shape and y.dtype == x.dtype
    assert jnp.allclose(y, _gelu_ref(x), atol=1e-5, rtol=1e-5)

    # bf16 I/O (compute stays in f32 inside the kernel).
    xb = jax.random.normal(k2, (4, 8, 128), dtype=jnp.float32).astype(jnp.bfloat16)
    yb = gelu(xb)
    jax.block_until_ready(yb)
    assert yb.shape == xb.shape and yb.dtype == jnp.bfloat16
    assert jnp.allclose(yb.astype(jnp.float32),
                        _gelu_ref(xb.astype(jnp.float32)),
                        atol=2e-2, rtol=2e-2)

    # Multi-step grid path (exactly divisible, several blocks).
    xg = jax.random.normal(k3, (32, 128, 128), dtype=jnp.float32)
    yg = gelu(xg)
    jax.block_until_ready(yg)
    assert jnp.allclose(yg, _gelu_ref(xg), atol=1e-5, rtol=1e-5)

    # Ragged fallback path (size not a multiple of 128).
    xr = jax.random.normal(k4, (5, 7, 3), dtype=jnp.float32)
    yr = gelu(xr)
    jax.block_until_ready(yr)
    assert yr.shape == xr.shape
    assert jnp.allclose(yr, _gelu_ref(xr), atol=1e-5, rtol=1e-5)

    print("KERNEL_OK")
</pallas_src>

<mosaic_0001>
module attributes {stable_mosaic.version = 11 : i64} {
  func.func @_gelu_kernel(%arg0: i32, %arg1: memref<1x2048xf32, #tpu.memory_space<vmem>>, %arg2: memref<1x2048xf32, #tpu.memory_space<vmem>>) attributes {dimension_semantics = [#tpu.dimension_semantics<parallel>], iteration_bounds = array<i64: 1>, scalar_prefetch = 0 : i64, scratch_operands = 0 : i64, tpu.core_type = #tpu.core_type<tc>, window_params = [{transform_indices = @transform_0, window_bounds = array<i64: 1, 2048>}, {transform_indices = @transform_1, window_bounds = array<i64: 1, 2048>}]} {
    %c0 = arith.constant 0 : index
    %c0_0 = arith.constant 0 : index
    %0 = vector.load %arg1[%c0, %c0_0] : memref<1x2048xf32, #tpu.memory_space<vmem>>, vector<1x2048xf32>
    %1 = arith.mulf %0, %0 : vector<1x2048xf32>
    %cst = arith.constant 0.0356774069 : f32
    %2 = vector.broadcast %cst : f32 to vector<1x2048xf32>
    %3 = arith.mulf %2, %1 : vector<1x2048xf32>
    %cst_1 = arith.constant 0.797884583 : f32
    %4 = vector.broadcast %cst_1 : f32 to vector<1x2048xf32>
    %5 = arith.addf %4, %3 : vector<1x2048xf32>
    %6 = arith.mulf %0, %5 : vector<1x2048xf32>
    %cst_2 = arith.constant 5.000000e-01 : f32
    %7 = vector.broadcast %cst_2 : f32 to vector<1x2048xf32>
    %8 = arith.mulf %7, %0 : vector<1x2048xf32>
    %9 = math.tanh %6 : vector<1x2048xf32>
    %10 = arith.mulf %8, %9 : vector<1x2048xf32>
    %11 = arith.addf %8, %10 : vector<1x2048xf32>
    %c0_3 = arith.constant 0 : index
    %c0_4 = arith.constant 0 : index
    %12 = vector.load %arg2[%c0_3, %c0_4] : memref<1x2048xf32, #tpu.memory_space<vmem>>, vector<1x2048xf32>
    tpu.vector_store %arg2[%c0_3, %c0_4], %11 {strides = array<i32>} : memref<1x2048xf32, #tpu.memory_space<vmem>>, vector<1x2048xf32>,
    return
  }
  func.func @transform_0(%arg0: i32) -> (i32, i32) {
    %c0_i32 = arith.constant 0 : i32
    %c0_i32_0 = arith.constant 0 : i32
    return %arg0, %c0_i32 : i32, i32
  }
  func.func @transform_1(%arg0: i32) -> (i32, i32) {
    %c0_i32 = arith.constant 0 : i32
    %c0_i32_0 = arith.constant 0 : i32
    return %arg0, %c0_i32 : i32, i32
  }
}

</mosaic_0001>

<bundles_post_ra>
// kernel: tpu_custom_call.1
= control target key start
LH: loop header
LB: loop body
LE: loop exit
PB: predicated region body
PF: predicated region fallthrough
CT: control target
= control target key end

     0   :  { %6 = vsyncpa [#allocation3], 0  ;;  %s146_s0 = inlined_call_operand.hbm [shape: f32[1,2048], index: 0, kind: input, shape index: {}]   ;;  %s147_s1 = inlined_call_operand.hbm [shape: f32[1,2048], index: 1, kind: output, shape index: {}]  }
   0x1   :  { %7 = vsyncpa [#allocation4], 0  ;;  %s110_s6 = smov [#allocation2]   ;;  %s62_s10 = scalar_lea.hbm %s146_s0, 256 }
   0x2   :  { %s14_s7 = sshll.u32 %s110_s6, 4  ;;  %p63_p0 = scmp.ne.s32.totalorder %s146_s0, %s62_s10  ;;  %s15_s7 = int_to_ptr.vmem [resolvable:$true] %s14_s7 }
   0x3   :  { %p66_p1 = scmp.lt.u32.totalorder %s62_s10, %s146_s0 }
   0x5   :  { %p68_p2 = pnand %p66_p1, %p63_p0 }
   0x7   :  { %71 = shalt.err (!%p68_p2)
}
   0x8   :  { %s72_s15 = scalar_lea.vmem %s15_s7, 256  ;;  %p77_p4 = scmp.lt.s32.totalorder %s15_s7, %s15_s7 }
   0x9   :  { %p73_p3 = scmp.ne.s32.totalorder %s15_s7, %s72_s15  ;;  %p78_p5 = scmp.lt.s32.totalorder %s72_s15, %s72_s15 }
   0xb   :  { %p79_p6 = por %p78_p5, %p77_p4 }
   0xd   :  { %p80_p7 = pnand %p79_p6, %p73_p3 }
   0xf   :  { %83 = shalt.err (!%p80_p7)
}
  0x10   :  { %17 = dma.hbm_to_vmem [thread:$0]  %s146_s0, 256, %s15_s7, [#allocation3]  }
  0x11   :  { %106 = dma.done.wait [#allocation3], 256  }
  0x12   :  { %107 = vsyncadd [#allocation3], 4294967040  ;;  %v21_v0 = vld [vmem:[#allocation2] sm:$0xff]  ;;  %v22_v1 = vld [vmem:[#allocation2 + $0x8] sm:$0xff]  ;;  %s111_s0 = smov [#allocation5]  }
  0x13   :  { %v23_v2 = vmul.f32 %v21_v0, %v21_v0  ;;  %v24_v3 = vmul.f32 %v22_v1, %v22_v1  ;;  %v31_v10 = vmul.f32 0.5, %v21_v0  ;;  %v32_v11 = vmul.f32 0.5, %v22_v1  ;;  %s47_s18 = sshll.u32 %s111_s0, 4  ;;  %s48_s18 = int_to_ptr.vmem [resolvable:$true] %s47_s18 }
  0x14   :  { %s84_s19 = scalar_lea.vmem %s48_s18, 256  ;;  %p89_p9 = scmp.lt.s32.totalorder %s48_s18, %s48_s18 }
  0x15   :  { %v25_v4 = vmul.f32 0.035677407, %v23_v2  ;;  %v26_v5 = vmul.f32 0.035677407, %v24_v3  ;;  %p85_p8 = scmp.ne.s32.totalorder %s48_s18, %s84_s19  ;;  %p90_p10 = scmp.lt.s32.totalorder %s84_s19, %s84_s19 }
  0x17   :  { %v27_v6 = vadd.f32 0.7978846, %v25_v4  ;;  %v28_v7 = vadd.f32 0.7978846, %v26_v5  ;;  %p91_p11 = por %p90_p10, %p89_p9 }
  0x19   :  { %v29_v8 = vmul.f32 %v27_v6, %v21_v0  ;;  %v30_v9 = vmul.f32 %v28_v7, %v22_v1  ;;  %p92_p12 = pnand %p91_p11, %p85_p8 }
  0x1b   :  { %58 = vtanh.f32 %v29_v8 }
  0x1c   :  { %60 = vtanh.f32 %v30_v9 }
  0x25   :  { %v59_v12 = vpop.eup %58 }
  0x26   :  { %v61_v13 = vpop.eup %60  ;;  %v35_v14 = vmul.f32 %v59_v12, %v31_v10 }
  0x27   :  { %v36_v15 = vmul.f32 %v61_v13, %v32_v11 }
  0x28   :  { %v37_v16 = vadd.f32 %v35_v14, %v31_v10 }
  0x29   :  { %v38_v17 = vadd.f32 %v36_v15, %v32_v11 }
  0x2a   :  { %39 = vst [vmem:[#allocation5] sm:$0xff] %v37_v16 }
  0x2b   :  { %40 = vst [vmem:[#allocation5 + $0x8] sm:$0xff] %v38_v17 }
  0x2c   :  { %95 = shalt.err (!%p92_p12)
}
  0x2d   :  { %s96_s22 = scalar_lea.hbm %s147_s1, 256 }
  0x2e   :  { %p97_p13 = scmp.ne.s32.totalorder %s147_s1, %s96_s22  ;;  %p100_p0 = scmp.lt.u32.totalorder %s96_s22, %s147_s1 }
  0x30   :  { %p102_p1 = pnand %p100_p0, %p97_p13 }
  0x32   :  { %105 = shalt.err (!%p102_p1)
}
  0x33   :  { %50 = dma.vmem_to_hbm [thread:$0]  %s48_s18, 256, %s147_s1, [#allocation4]  }
  0x34   :  { %108 = dma.done.wait [#allocation4], 256  }
  0x35   :  { %109 = vsyncadd [#allocation4], 4294967040 }
  0x36   :  { %54 = vsyncpa [#allocation3], 1 }
  0x37   :  { %55 = vsyncpa [#allocation4], 1 }

</bundles_post_ra>
